<compile_context>
chip_gen: v7x
topology: tpu7x:2x2x1
jax: 0.10.0
libtpu: 0.0.40
codegen_flags: <defaults>
</compile_context>

<pallas_src>
import functools

import jax
import jax.numpy as jnp
import numpy as np
from jax import lax
from jax.experimental import pallas as pl
from jax.experimental.pallas import tpu as pltpu

LANE = 128
MAX_BLOCK_ROWS = 4096          # 2 MiB per f32 input block; 2 inputs x 2 buffers ~= 8 MiB VMEM
N_ACC = 5                      # sum(t), sum(|t|), sum(t*s), sum(|t|*s), sum(s);  s = sigmoid(-y)
NCORES = 2                     # parallel grid axis: sharded across TCs on v7x, serial elsewhere
VMEM_LIMIT_BYTES = 32 * 1024 * 1024


def _sublane_multiple(dtype):
    # native (sublane, 128) tile: 32-bit -> (8,128), 16-bit -> (16,128), 8-bit -> (32,128)
    return 8 * (4 // jnp.dtype(dtype).itemsize)


def _use_approx_recip():
    # approx EUP reciprocal only where VALU/EUP headroom is tight (v7x); exact elsewhere.
    try:
        return "7" in jax.devices()[0].device_kind
    except Exception:
        return False


def _pnu_sums_kernel(t_ref, y_ref, out_ref, *, block_rows, blocks_per_core,
                     full_blocks, n_valid, need_mask, approx_recip):
    c = pl.program_id(0)                       # "core" (parallel) axis
    i = pl.program_id(1)                       # reduction (arbitrary) axis
    g = c * blocks_per_core + i                # global (unclamped) block index

    @pl.when(i == 0)
    def _init():
        out_ref[...] = jnp.zeros_like(out_ref)

    t = t_ref[...].astype(jnp.float32)
    y = y_ref[...].astype(jnp.float32)

    # loss_func(-y) = sigmoid(-y) = 1 / (1 + exp(y));  exp goes to the EUP.
    # exp(y) overflow -> inf -> reciprocal 0: the correct saturated sigmoid limit.
    denom = 1.0 + jnp.exp(y)
    if approx_recip:
        s = pl.reciprocal(denom, approx=True)  # v7x: keep the VALU slot free
    else:
        s = 1.0 / denom                        # exact; free on HBM-bound v5e/v6e

    def fold(x):
        # (block_rows,128) -> (8,128): sublane-aligned VALU add tree; keeps the resident
        # accumulator (= the output block) a fixed 20 KiB regardless of block size.
        # NOTE: per-lane f32 partial sums are exact only up to ~2^24 contributions/lane.
        return jnp.sum(x.reshape(block_rows // 8, 8, LANE), axis=0)

    def accumulate(tt, ss):
        aa = jnp.abs(tt)
        out_ref[0, 0] += fold(tt)              # sum(t)
        out_ref[0, 1] += fold(aa)              # sum(|t|)
        out_ref[0, 2] += fold(tt * ss)         # sum(t * sigmoid(-y))
        out_ref[0, 3] += fold(aa * ss)         # sum(|t| * sigmoid(-y))
        out_ref[0, 4] += fold(ss)              # sum(sigmoid(-y))

    if need_mask:
        # Only blocks extending past the n_valid-th element (ragged tail, pad lanes,
        # phantom blocks from the core split) pay for the mask.
        needs = g >= full_blocks

        @pl.when(jnp.logical_not(needs))
        def _full_block():
            accumulate(t, s)

        @pl.when(needs)
        def _tail_block():
            # valid element <=> in-block offset < (n_valid - g*block_elems).
            # (n_valid assumed < 2^31 so this scalar arithmetic fits in int32.)
            rem = n_valid - g * (block_rows * LANE)      # <= 0 for fully-phantom blocks
            row = lax.broadcasted_iota(jnp.int32, (block_rows, LANE), 0)
            col = lax.broadcasted_iota(jnp.int32, (block_rows, LANE), 1)
            valid = row * LANE + col < rem
            # jnp.where (not multiply) so NaN/Inf garbage in the OOB region is killed.
            accumulate(jnp.where(valid, t, 0.0), jnp.where(valid, s, 0.0))
    else:
        accumulate(t, s)


def pnu_loss(outputs, targets, p_ratio, eta):
    """Pallas implementation of PNULoss.forward(outputs, targets)."""
    y = outputs.reshape(-1)
    t = targets.reshape(-1)
    assert y.shape == t.shape, "outputs and targets must have the same number of elements"
    n = y.shape[0]

    # Stream native dtypes (bf16 logits / int8 targets keep their HBM byte count);
    # only 64-bit and bool fall back to an f32 cast.
    def _prep(x):
        if x.dtype == jnp.bool_ or jnp.dtype(x.dtype).itemsize > 4:
            return x.astype(jnp.float32)
        return x
    y = _prep(y)
    t = _prep(t)

    # (rows,128) reshape is free when n % 128 == 0 (the common case).
    # TODO(synk): when n % 128 != 0 this <128-element pad still materializes one copy of
    # each stream; a fully pad-free path would need 1-D lane blocks.
    rem128 = n % LANE
    if rem128:
        y = jnp.pad(y, (0, LANE - rem128))
        t = jnp.pad(t, (0, LANE - rem128))
    rows = y.shape[0] // LANE
    y2 = y.reshape(rows, LANE)
    t2 = t.reshape(rows, LANE)

    sub = max(_sublane_multiple(y2.dtype), _sublane_multiple(t2.dtype))
    tr = min(MAX_BLOCK_ROWS, ((rows + sub - 1) // sub) * sub)     # multiple of sub
    nblocks = pl.cdiv(rows, tr)
    bpc = pl.cdiv(nblocks, NCORES)                                 # blocks per "core"
    block_elems = tr * LANE
    covered = NCORES * bpc * block_elems
    need_mask = covered != n                    # ragged tail / pad lanes / phantom blocks
    full_blocks = n // block_elems              # blocks fully inside the valid data

    kernel = functools.partial(
        _pnu_sums_kernel, block_rows=tr, blocks_per_core=bpc, full_blocks=full_blocks,
        n_valid=n, need_mask=need_mask, approx_recip=_use_approx_recip())

    last = nblocks - 1
    # Phantom blocks (global index past the data) re-read the last real block; their
    # contribution is zeroed by the in-kernel mask, so the DMA always stays in bounds.
    in_map = lambda c, i: (jnp.minimum(c * bpc + i, last), 0)

    sums = pl.pallas_call(
        kernel,
        out_shape=jax.ShapeDtypeStruct((NCORES, N_ACC, 8, LANE), jnp.float32),
        grid_spec=pltpu.PrefetchScalarGridSpec(
            num_scalar_prefetch=0,
            grid=(NCORES, bpc),
            in_specs=[
                pl.BlockSpec((tr, LANE), in_map),       # targets  (native dtype)
                pl.BlockSpec((tr, LANE), in_map),       # outputs  (native dtype)
            ],
            out_specs=pl.BlockSpec((1, N_ACC, 8, LANE), lambda c, i: (c, 0, 0, 0)),
        ),
        compiler_params=pltpu.CompilerParams(
            dimension_semantics=("parallel", "arbitrary"),
            vmem_limit_bytes=VMEM_LIMIT_BYTES,
        ),
    )(t2, y2)

    # ---- finalize: trivial scalar math on the 5 partial sums, in plain JAX ----------
    p = jnp.sum(sums, axis=(0, 2, 3))           # (N_ACC,)
    sum_t, sum_a, sum_ts, sum_as, sum_s = p[0], p[1], p[2], p[3], p[4]
    nf = jnp.float32(n)

    sum_p = 0.5 * (sum_a + sum_t)               # sum(max(t,0))
    sum_n = 0.5 * (sum_a - sum_t)               # sum(max(-t,0))
    sum_u = nf - sum_a                          # sum(1 - |t|)
    num_p_plus = 0.5 * (sum_as + sum_ts)        # sum(p_idx * sigmoid(-y))
    num_n_plus = 0.5 * (sum_as - sum_ts)        # sum(n_idx * sigmoid(-y))
    num_p_minus = sum_p - num_p_plus            # sigmoid(y) = 1 - sigmoid(-y)
    num_n_minus = sum_n - num_n_plus
    num_u_plus = sum_s - sum_as
    num_u_minus = sum_u - num_u_plus

    n_p = jnp.maximum(1.0, sum_p)
    n_n = jnp.maximum(1.0, sum_n)
    n_u = jnp.maximum(1.0, sum_u)

    r_p_plus, r_p_minus = num_p_plus / n_p, num_p_minus / n_p
    r_n_plus, r_n_minus = num_n_plus / n_n, num_n_minus / n_n
    r_u_plus, r_u_minus = num_u_plus / n_u, num_u_minus / n_u

    p_ratio = jnp.asarray(p_ratio, dtype=jnp.float32).reshape(2)
    risk_pn = p_ratio[0] * r_p_plus + p_ratio[1] * r_n_minus
    eta = float(eta)                             # static hyperparameter branch, like the module
    if eta >= 0:
        risk_pu = p_ratio[0] * (r_p_plus - r_p_minus) + r_u_minus
        return (1.0 - eta) * risk_pn + eta * risk_pu
    risk_nu = p_ratio[1] * (r_n_minus - r_n_plus) + r_u_plus
    return (1.0 + eta) * risk_pn - eta * risk_nu


# ----------------------------- pure-JAX reference --------------------------------------
def _sigmoid(x):
    return 1.0 / (1.0 + jnp.exp(-x))


def pnu_loss_ref(outputs, targets, p_ratio, eta):
    t = targets.reshape(-1).astype(jnp.float32)
    y = outputs.reshape(-1).astype(jnp.float32)
    p_idx = jnp.maximum(t, 0.0)
    n_idx = jnp.maximum(-t, 0.0)
    u_idx = 1.0 - jnp.abs(t)

    def risk(idx, yy):
        nn_ = jnp.maximum(1.0, jnp.sum(idx))
        return jnp.sum(idx * _sigmoid(-yy)) / nn_

    r_p_plus, r_p_minus = risk(p_idx, y), risk(p_idx, -y)
    r_n_plus, r_n_minus = risk(n_idx, y), risk(n_idx, -y)
    r_u_plus, r_u_minus = risk(u_idx, y), risk(u_idx, -y)
    risk_pn = p_ratio[0] * r_p_plus + p_ratio[1] * r_n_minus
    if eta >= 0:
        return (1.0 - eta) * risk_pn + eta * (p_ratio[0] * (r_p_plus - r_p_minus) + r_u_minus)
    return (1.0 + eta) * risk_pn - eta * (p_ratio[1] * (r_n_minus - r_n_plus) + r_u_plus)


if __name__ == "__main__":
    key = jax.random.PRNGKey(0)
    k1, k2, k3 = jax.random.split(key, 3)
    p_ratio = jnp.array([0.4, 0.6], dtype=jnp.float32)

    outputs = jax.random.normal(k1, (2, 4, 16, 16), dtype=jnp.float32)            # logits
    targets = jax.random.randint(k2, (2, 4, 16, 16), minval=-1, maxval=2).astype(jnp.float32)

    cases = [
        (outputs, targets, 0.3),                                                  # eta >= 0 branch
        (outputs, targets, -0.25),                                                # eta < 0 branch
        (outputs * 200.0, targets, 0.3),                                          # exp overflow / saturation
        (jax.random.normal(k3, (3, 5, 7), dtype=jnp.float32),                     # n=105: ragged tail mask
         jax.random.randint(k2, (3, 5, 7), minval=-1, maxval=2).astype(jnp.float32), 0.3),
        (outputs.astype(jnp.bfloat16), targets, -0.25),                           # native bf16 streaming
    ]
    for o, t, eta in cases:
        loss = pnu_loss(o, t, p_ratio, eta)
        jax.block_until_ready(loss)
        ref = pnu_loss_ref(o, t, p_ratio, eta)
        # tolerance covers the approximate EUP reciprocal used only on v7x
        np.testing.assert_allclose(np.asarray(loss), np.asarray(ref), rtol=2e-3, atol=1e-5)

    print("KERNEL_OK")
</pallas_src>

<mosaic_0001>
module attributes {stable_mosaic.version = 11 : i64} {
  func.func @_pnu_sums_kernel(%arg0: i32, %arg1: i32, %arg2: memref<16x128xf32, #tpu.memory_space<vmem>>, %arg3: memref<16x128xf32, #tpu.memory_space<vmem>>, %arg4: memref<1x5x8x128xf32, #tpu.memory_space<vmem>>) attributes {dimension_semantics = [#tpu.dimension_semantics<parallel>, #tpu.dimension_semantics<arbitrary>], iteration_bounds = array<i64: 2, 1>, scalar_prefetch = 0 : i64, scratch_operands = 0 : i64, tpu.core_type = #tpu.core_type<tc>, window_params = [{transform_indices = @transform_0, window_bounds = array<i64: 16, 128>}, {transform_indices = @transform_1, window_bounds = array<i64: 16, 128>}, {transform_indices = @transform_2, window_bounds = array<i64: 1, 5, 8, 128>}]} {
    %c1_i32 = arith.constant 1 : i32
    %0 = arith.muli %arg0, %c1_i32 : i32
    %1 = arith.addi %0, %arg1 : i32
    %c0_i32 = arith.constant 0 : i32
    %2 = arith.cmpi eq, %arg1, %c0_i32 : i32
    %3 = arith.extui %2 : i1 to i32
    %c0_i32_0 = arith.constant 0 : i32
    %4 = arith.cmpi ne, %3, %c0_i32_0 : i32
    scf.if %4 {
      %cst_8 = arith.constant 0.000000e+00 : f32
      %18 = vector.broadcast %cst_8 : f32 to vector<1x5x8x128xf32>
      %c0_9 = arith.constant 0 : index
      %c0_10 = arith.constant 0 : index
      %c0_11 = arith.constant 0 : index
      %c0_12 = arith.constant 0 : index
      %19 = vector.load %arg4[%c0_9, %c0_10, %c0_11, %c0_12] : memref<1x5x8x128xf32, #tpu.memory_space<vmem>>, vector<1x5x8x128xf32>
      tpu.vector_store %arg4[%c0_9, %c0_10, %c0_11, %c0_12], %18 {strides = array<i32>} : memref<1x5x8x128xf32, #tpu.memory_space<vmem>>, vector<1x5x8x128xf32>,
    } else {
    }
    %c0 = arith.constant 0 : index
    %c0_1 = arith.constant 0 : index
    %5 = vector.load %arg2[%c0, %c0_1] : memref<16x128xf32, #tpu.memory_space<vmem>>, vector<16x128xf32>
    %c0_2 = arith.constant 0 : index
    %c0_3 = arith.constant 0 : index
    %6 = vector.load %arg3[%c0_2, %c0_3] : memref<16x128xf32, #tpu.memory_space<vmem>>, vector<16x128xf32>
    %7 = math.exp %6 : vector<16x128xf32>
    %cst = arith.constant 1.000000e+00 : f32
    %8 = vector.broadcast %cst : f32 to vector<16x128xf32>
    %9 = arith.addf %8, %7 : vector<16x128xf32>
    %cst_4 = arith.constant 1.000000e+00 : f32
    %10 = vector.broadcast %cst_4 : f32 to vector<16x128xf32>
    %11 = arith.divf %10, %9 : vector<16x128xf32>
    %c1_i32_5 = arith.constant 1 : i32
    %12 = arith.cmpi sge, %1, %c1_i32_5 : i32
    %true = arith.constant true
    %13 = arith.xori %12, %true : i1
    %14 = arith.extui %13 : i1 to i32
    %c0_i32_6 = arith.constant 0 : i32
    %15 = arith.cmpi ne, %14, %c0_i32_6 : i32
    scf.if %15 {
      %18 = math.absf %5 : vector<16x128xf32>
      %c0_8 = arith.constant 0 : index
      %c0_9 = arith.constant 0 : index
      %c0_10 = arith.constant 0 : index
      %c0_11 = arith.constant 0 : index
      %19 = vector.load %arg4[%c0_8, %c0_9, %c0_10, %c0_11] : memref<1x5x8x128xf32, #tpu.memory_space<vmem>>, vector<1x1x8x128xf32>
      %20 = vector.shape_cast %19 : vector<1x1x8x128xf32> to vector<8x128xf32>
      %21 = vector.shape_cast %5 : vector<16x128xf32> to vector<2x8x128xf32>
      %cst_12 = arith.constant dense<0.000000e+00> : vector<8x128xf32>
      %22 = vector.multi_reduction <add>, %21, %cst_12 [0] : vector<2x8x128xf32> to vector<8x128xf32>
      %23 = arith.addf %20, %22 : vector<8x128xf32>
      %c0_13 = arith.constant 0 : index
      %c0_14 = arith.constant 0 : index
      %c0_15 = arith.constant 0 : index
      %c0_16 = arith.constant 0 : index
      %24 = vector.load %arg4[%c0_13, %c0_14, %c0_15, %c0_16] : memref<1x5x8x128xf32, #tpu.memory_space<vmem>>, vector<1x1x8x128xf32>
      %25 = vector.shape_cast %24 : vector<1x1x8x128xf32> to vector<8x128xf32>
      %26 = vector.shape_cast %23 : vector<8x128xf32> to vector<1x1x8x128xf32>
      tpu.vector_store %arg4[%c0_13, %c0_14, %c0_15, %c0_16], %26 {strides = array<i32>} : memref<1x5x8x128xf32, #tpu.memory_space<vmem>>, vector<1x1x8x128xf32>,
      %c0_17 = arith.constant 0 : index
      %c1 = arith.constant 1 : index
      %c0_18 = arith.constant 0 : index
      %c0_19 = arith.constant 0 : index
      %27 = vector.load %arg4[%c0_17, %c1, %c0_18, %c0_19] : memref<1x5x8x128xf32, #tpu.memory_space<vmem>>, vector<1x1x8x128xf32>
      %28 = vector.shape_cast %27 : vector<1x1x8x128xf32> to vector<8x128xf32>
      %29 = vector.shape_cast %18 : vector<16x128xf32> to vector<2x8x128xf32>
      %cst_20 = arith.constant dense<0.000000e+00> : vector<8x128xf32>
      %30 = vector.multi_reduction <add>, %29, %cst_20 [0] : vector<2x8x128xf32> to vector<8x128xf32>
      %31 = arith.addf %28, %30 : vector<8x128xf32>
      %c0_21 = arith.constant 0 : index
      %c1_22 = arith.constant 1 : index
      %c0_23 = arith.constant 0 : index
      %c0_24 = arith.constant 0 : index
      %32 = vector.load %arg4[%c0_21, %c1_22, %c0_23, %c0_24] : memref<1x5x8x128xf32, #tpu.memory_space<vmem>>, vector<1x1x8x128xf32>
      %33 = vector.shape_cast %32 : vector<1x1x8x128xf32> to vector<8x128xf32>
      %34 = vector.shape_cast %31 : vector<8x128xf32> to vector<1x1x8x128xf32>
      tpu.vector_store %arg4[%c0_21, %c1_22, %c0_23, %c0_24], %34 {strides = array<i32>} : memref<1x5x8x128xf32, #tpu.memory_space<vmem>>, vector<1x1x8x128xf32>,
      %c0_25 = arith.constant 0 : index
      %c2 = arith.constant 2 : index
      %c0_26 = arith.constant 0 : index
      %c0_27 = arith.constant 0 : index
      %35 = vector.load %arg4[%c0_25, %c2, %c0_26, %c0_27] : memref<1x5x8x128xf32, #tpu.memory_space<vmem>>, vector<1x1x8x128xf32>
      %36 = vector.shape_cast %35 : vector<1x1x8x128xf32> to vector<8x128xf32>
      %37 = arith.mulf %5, %11 : vector<16x128xf32>
      %38 = vector.shape_cast %37 : vector<16x128xf32> to vector<2x8x128xf32>
      %cst_28 = arith.constant dense<0.000000e+00> : vector<8x128xf32>
      %39 = vector.multi_reduction <add>, %38, %cst_28 [0] : vector<2x8x128xf32> to vector<8x128xf32>
      %40 = arith.addf %36, %39 : vector<8x128xf32>
      %c0_29 = arith.constant 0 : index
      %c2_30 = arith.constant 2 : index
      %c0_31 = arith.constant 0 : index
      %c0_32 = arith.constant 0 : index
      %41 = vector.load %arg4[%c0_29, %c2_30, %c0_31, %c0_32] : memref<1x5x8x128xf32, #tpu.memory_space<vmem>>, vector<1x1x8x128xf32>
      %42 = vector.shape_cast %41 : vector<1x1x8x128xf32> to vector<8x128xf32>
      %43 = vector.shape_cast %40 : vector<8x128xf32> to vector<1x1x8x128xf32>
      tpu.vector_store %arg4[%c0_29, %c2_30, %c0_31, %c0_32], %43 {strides = array<i32>} : memref<1x5x8x128xf32, #tpu.memory_space<vmem>>, vector<1x1x8x128xf32>,
      %c0_33 = arith.constant 0 : index
      %c3 = arith.constant 3 : index
      %c0_34 = arith.constant 0 : index
      %c0_35 = arith.constant 0 : index
      %44 = vector.load %arg4[%c0_33, %c3, %c0_34, %c0_35] : memref<1x5x8x128xf32, #tpu.memory_space<vmem>>, vector<1x1x8x128xf32>
      %45 = vector.shape_cast %44 : vector<1x1x8x128xf32> to vector<8x128xf32>
      %46 = arith.mulf %18, %11 : vector<16x128xf32>
      %47 = vector.shape_cast %46 : vector<16x128xf32> to vector<2x8x128xf32>
      %cst_36 = arith.constant dense<0.000000e+00> : vector<8x128xf32>
      %48 = vector.multi_reduction <add>, %47, %cst_36 [0] : vector<2x8x128xf32> to vector<8x128xf32>
      %49 = arith.addf %45, %48 : vector<8x128xf32>
      %c0_37 = arith.constant 0 : index
      %c3_38 = arith.constant 3 : index
      %c0_39 = arith.constant 0 : index
      %c0_40 = arith.constant 0 : index
      %50 = vector.load %arg4[%c0_37, %c3_38, %c0_39, %c0_40] : memref<1x5x8x128xf32, #tpu.memory_space<vmem>>, vector<1x1x8x128xf32>
      %51 = vector.shape_cast %50 : vector<1x1x8x128xf32> to vector<8x128xf32>
      %52 = vector.shape_cast %49 : vector<8x128xf32> to vector<1x1x8x128xf32>
      tpu.vector_store %arg4[%c0_37, %c3_38, %c0_39, %c0_40], %52 {strides = array<i32>} : memref<1x5x8x128xf32, #tpu.memory_space<vmem>>, vector<1x1x8x128xf32>,
      %c0_41 = arith.constant 0 : index
      %c4 = arith.constant 4 : index
      %c0_42 = arith.constant 0 : index
      %c0_43 = arith.constant 0 : index
      %53 = vector.load %arg4[%c0_41, %c4, %c0_42, %c0_43] : memref<1x5x8x128xf32, #tpu.memory_space<vmem>>, vector<1x1x8x128xf32>
      %54 = vector.shape_cast %53 : vector<1x1x8x128xf32> to vector<8x128xf32>
      %55 = vector.shape_cast %11 : vector<16x128xf32> to vector<2x8x128xf32>
      %cst_44 = arith.constant dense<0.000000e+00> : vector<8x128xf32>
      %56 = vector.multi_reduction <add>, %55, %cst_44 [0] : vector<2x8x128xf32> to vector<8x128xf32>
      %57 = arith.addf %54, %56 : vector<8x128xf32>
      %c0_45 = arith.constant 0 : index
      %c4_46 = arith.constant 4 : index
      %c0_47 = arith.constant 0 : index
      %c0_48 = arith.constant 0 : index
      %58 = vector.load %arg4[%c0_45, %c4_46, %c0_47, %c0_48] : memref<1x5x8x128xf32, #tpu.memory_space<vmem>>, vector<1x1x8x128xf32>
      %59 = vector.shape_cast %58 : vector<1x1x8x128xf32> to vector<8x128xf32>
      %60 = vector.shape_cast %57 : vector<8x128xf32> to vector<1x1x8x128xf32>
      tpu.vector_store %arg4[%c0_45, %c4_46, %c0_47, %c0_48], %60 {strides = array<i32>} : memref<1x5x8x128xf32, #tpu.memory_space<vmem>>, vector<1x1x8x128xf32>,
    } else {
    }
    %16 = arith.extui %12 : i1 to i32
    %c0_i32_7 = arith.constant 0 : i32
    %17 = arith.cmpi ne, %16, %c0_i32_7 : i32
    scf.if %17 {
      %c2048_i32 = arith.constant 2048 : i32
      %18 = arith.muli %1, %c2048_i32 : i32
      %c2048_i32_8 = arith.constant 2048 : i32
      %19 = arith.subi %c2048_i32_8, %18 : i32
      %20 = tpu.iota {dimensions = array<i32: 0>} : vector<16x128xi32>
      %21 = tpu.iota {dimensions = array<i32: 1>} : vector<16x128xi32>
      %c128_i32 = arith.constant 128 : i32
      %22 = vector.broadcast %c128_i32 : i32 to vector<16x128xi32>
      %23 = arith.muli %20, %22 : vector<16x128xi32>
      %24 = arith.addi %23, %21 : vector<16x128xi32>
      %25 = vector.broadcast %19 : i32 to vector<16x128xi32>
      %26 = arith.cmpi slt, %24, %25 : vector<16x128xi32>
      %cst_9 = arith.constant 0.000000e+00 : f32
      %27 = vector.broadcast %cst_9 : f32 to vector<16x128xf32>
      %28 = arith.select %26, %5, %27 : vector<16x128xi1>, vector<16x128xf32>
      %cst_10 = arith.constant 0.000000e+00 : f32
      %29 = vector.broadcast %cst_10 : f32 to vector<16x128xf32>
      %30 = arith.select %26, %11, %29 : vector<16x128xi1>, vector<16x128xf32>
      %31 = math.absf %28 : vector<16x128xf32>
      %c0_11 = arith.constant 0 : index
      %c0_12 = arith.constant 0 : index
      %c0_13 = arith.constant 0 : index
      %c0_14 = arith.constant 0 : index
      %32 = vector.load %arg4[%c0_11, %c0_12, %c0_13, %c0_14] : memref<1x5x8x128xf32, #tpu.memory_space<vmem>>, vector<1x1x8x128xf32>
      %33 = vector.shape_cast %32 : vector<1x1x8x128xf32> to vector<8x128xf32>
      %34 = vector.shape_cast %28 : vector<16x128xf32> to vector<2x8x128xf32>
      %cst_15 = arith.constant dense<0.000000e+00> : vector<8x128xf32>
      %35 = vector.multi_reduction <add>, %34, %cst_15 [0] : vector<2x8x128xf32> to vector<8x128xf32>
      %36 = arith.addf %33, %35 : vector<8x128xf32>
      %c0_16 = arith.constant 0 : index
      %c0_17 = arith.constant 0 : index
      %c0_18 = arith.constant 0 : index
      %c0_19 = arith.constant 0 : index
      %37 = vector.load %arg4[%c0_16, %c0_17, %c0_18, %c0_19] : memref<1x5x8x128xf32, #tpu.memory_space<vmem>>, vector<1x1x8x128xf32>
      %38 = vector.shape_cast %37 : vector<1x1x8x128xf32> to vector<8x128xf32>
      %39 = vector.shape_cast %36 : vector<8x128xf32> to vector<1x1x8x128xf32>
      tpu.vector_store %arg4[%c0_16, %c0_17, %c0_18, %c0_19], %39 {strides = array<i32>} : memref<1x5x8x128xf32, #tpu.memory_space<vmem>>, vector<1x1x8x128xf32>,
      %c0_20 = arith.constant 0 : index
      %c1 = arith.constant 1 : index
      %c0_21 = arith.constant 0 : index
      %c0_22 = arith.constant 0 : index
      %40 = vector.load %arg4[%c0_20, %c1, %c0_21, %c0_22] : memref<1x5x8x128xf32, #tpu.memory_space<vmem>>, vector<1x1x8x128xf32>
      %41 = vector.shape_cast %40 : vector<1x1x8x128xf32> to vector<8x128xf32>
      %42 = vector.shape_cast %31 : vector<16x128xf32> to vector<2x8x128xf32>
      %cst_23 = arith.constant dense<0.000000e+00> : vector<8x128xf32>
      %43 = vector.multi_reduction <add>, %42, %cst_23 [0] : vector<2x8x128xf32> to vector<8x128xf32>
      %44 = arith.addf %41, %43 : vector<8x128xf32>
      %c0_24 = arith.constant 0 : index
      %c1_25 = arith.constant 1 : index
      %c0_26 = arith.constant 0 : index
      %c0_27 = arith.constant 0 : index
      %45 = vector.load %arg4[%c0_24, %c1_25, %c0_26, %c0_27] : memref<1x5x8x128xf32, #tpu.memory_space<vmem>>, vector<1x1x8x128xf32>
      %46 = vector.shape_cast %45 : vector<1x1x8x128xf32> to vector<8x128xf32>
      %47 = vector.shape_cast %44 : vector<8x128xf32> to vector<1x1x8x128xf32>
      tpu.vector_store %arg4[%c0_24, %c1_25, %c0_26, %c0_27], %47 {strides = array<i32>} : memref<1x5x8x128xf32, #tpu.memory_space<vmem>>, vector<1x1x8x128xf32>,
      %c0_28 = arith.constant 0 : index
      %c2 = arith.constant 2 : index
      %c0_29 = arith.constant 0 : index
      %c0_30 = arith.constant 0 : index
      %48 = vector.load %arg4[%c0_28, %c2, %c0_29, %c0_30] : memref<1x5x8x128xf32, #tpu.memory_space<vmem>>, vector<1x1x8x128xf32>
      %49 = vector.shape_cast %48 : vector<1x1x8x128xf32> to vector<8x128xf32>
      %50 = arith.mulf %28, %30 : vector<16x128xf32>
      %51 = vector.shape_cast %50 : vector<16x128xf32> to vector<2x8x128xf32>
      %cst_31 = arith.constant dense<0.000000e+00> : vector<8x128xf32>
      %52 = vector.multi_reduction <add>, %51, %cst_31 [0] : vector<2x8x128xf32> to vector<8x128xf32>
      %53 = arith.addf %49, %52 : vector<8x128xf32>
      %c0_32 = arith.constant 0 : index
      %c2_33 = arith.constant 2 : index
      %c0_34 = arith.constant 0 : index
      %c0_35 = arith.constant 0 : index
      %54 = vector.load %arg4[%c0_32, %c2_33, %c0_34, %c0_35] : memref<1x5x8x128xf32, #tpu.memory_space<vmem>>, vector<1x1x8x128xf32>
      %55 = vector.shape_cast %54 : vector<1x1x8x128xf32> to vector<8x128xf32>
      %56 = vector.shape_cast %53 : vector<8x128xf32> to vector<1x1x8x128xf32>
      tpu.vector_store %arg4[%c0_32, %c2_33, %c0_34, %c0_35], %56 {strides = array<i32>} : memref<1x5x8x128xf32, #tpu.memory_space<vmem>>, vector<1x1x8x128xf32>,
      %c0_36 = arith.constant 0 : index
      %c3 = arith.constant 3 : index
      %c0_37 = arith.constant 0 : index
      %c0_38 = arith.constant 0 : index
      %57 = vector.load %arg4[%c0_36, %c3, %c0_37, %c0_38] : memref<1x5x8x128xf32, #tpu.memory_space<vmem>>, vector<1x1x8x128xf32>
      %58 = vector.shape_cast %57 : vector<1x1x8x128xf32> to vector<8x128xf32>
      %59 = arith.mulf %31, %30 : vector<16x128xf32>
      %60 = vector.shape_cast %59 : vector<16x128xf32> to vector<2x8x128xf32>
      %cst_39 = arith.constant dense<0.000000e+00> : vector<8x128xf32>
      %61 = vector.multi_reduction <add>, %60, %cst_39 [0] : vector<2x8x128xf32> to vector<8x128xf32>
      %62 = arith.addf %58, %61 : vector<8x128xf32>
      %c0_40 = arith.constant 0 : index
      %c3_41 = arith.constant 3 : index
      %c0_42 = arith.constant 0 : index
      %c0_43 = arith.constant 0 : index
      %63 = vector.load %arg4[%c0_40, %c3_41, %c0_42, %c0_43] : memref<1x5x8x128xf32, #tpu.memory_space<vmem>>, vector<1x1x8x128xf32>
      %64 = vector.shape_cast %63 : vector<1x1x8x128xf32> to vector<8x128xf32>
      %65 = vector.shape_cast %62 : vector<8x128xf32> to vector<1x1x8x128xf32>
      tpu.vector_store %arg4[%c0_40, %c3_41, %c0_42, %c0_43], %65 {strides = array<i32>} : memref<1x5x8x128xf32, #tpu.memory_space<vmem>>, vector<1x1x8x128xf32>,
      %c0_44 = arith.constant 0 : index
      %c4 = arith.constant 4 : index
      %c0_45 = arith.constant 0 : index
      %c0_46 = arith.constant 0 : index
      %66 = vector.load %arg4[%c0_44, %c4, %c0_45, %c0_46] : memref<1x5x8x128xf32, #tpu.memory_space<vmem>>, vector<1x1x8x128xf32>
      %67 = vector.shape_cast %66 : vector<1x1x8x128xf32> to vector<8x128xf32>
      %68 = vector.shape_cast %30 : vector<16x128xf32> to vector<2x8x128xf32>
      %cst_47 = arith.constant dense<0.000000e+00> : vector<8x128xf32>
      %69 = vector.multi_reduction <add>, %68, %cst_47 [0] : vector<2x8x128xf32> to vector<8x128xf32>
      %70 = arith.addf %67, %69 : vector<8x128xf32>
      %c0_48 = arith.constant 0 : index
      %c4_49 = arith.constant 4 : index
      %c0_50 = arith.constant 0 : index
      %c0_51 = arith.constant 0 : index
      %71 = vector.load %arg4[%c0_48, %c4_49, %c0_50, %c0_51] : memref<1x5x8x128xf32, #tpu.memory_space<vmem>>, vector<1x1x8x128xf32>
      %72 = vector.shape_cast %71 : vector<1x1x8x128xf32> to vector<8x128xf32>
      %73 = vector.shape_cast %70 : vector<8x128xf32> to vector<1x1x8x128xf32>
      tpu.vector_store %arg4[%c0_48, %c4_49, %c0_50, %c0_51], %73 {strides = array<i32>} : memref<1x5x8x128xf32, #tpu.memory_space<vmem>>, vector<1x1x8x128xf32>,
    } else {
    }
    return
  }
  func.func @transform_0(%arg0: i32, %arg1: i32) -> (i32, i32) {
    %c1_i32 = arith.constant 1 : i32
    %0 = arith.muli %arg0, %c1_i32 : i32
    %1 = arith.addi %0, %arg1 : i32
    %c0_i32 = arith.constant 0 : i32
    %2 = arith.minsi %1, %c0_i32 : i32
    %c0_i32_0 = arith.constant 0 : i32
    %c0_i32_1 = arith.constant 0 : i32
    return %2, %c0_i32_0 : i32, i32
  }
  func.func @transform_1(%arg0: i32, %arg1: i32) -> (i32, i32) {
    %c1_i32 = arith.constant 1 : i32
    %0 = arith.muli %arg0, %c1_i32 : i32
    %1 = arith.addi %0, %arg1 : i32
    %c0_i32 = arith.constant 0 : i32
    %2 = arith.minsi %1, %c0_i32 : i32
    %c0_i32_0 = arith.constant 0 : i32
    %c0_i32_1 = arith.constant 0 : i32
    return %2, %c0_i32_0 : i32, i32
  }
  func.func @transform_2(%arg0: i32, %arg1: i32) -> (i32, i32, i32, i32) {
    %c0_i32 = arith.constant 0 : i32
    %c0_i32_0 = arith.constant 0 : i32
    %c0_i32_1 = arith.constant 0 : i32
    %c0_i32_2 = arith.constant 0 : i32
    return %arg0, %c0_i32, %c0_i32_0, %c0_i32_1 : i32, i32, i32, i32
  }
}

</mosaic_0001>

<bundles_post_ra>
// kernel: tpu_custom_call.1
= control target key start
LH: loop header
LB: loop body
LE: loop exit
PB: predicated region body
PF: predicated region fallthrough
CT: control target
= control target key end

     0   :  { %7 = vsyncpa [#allocation3], 0  ;;  %s1050_s0 = inlined_call_operand.hbm [shape: f32[16,128], index: 0, kind: input, shape index: {}]   ;;  %s1051_s1 = inlined_call_operand.hbm [shape: f32[16,128], index: 1, kind: input, shape index: {}]   ;;  %s1052_s2 = inlined_call_operand.hbm [shape: f32[2,5,8,128], index: 2, kind: output, shape index: {}]  }
   0x1   :  { %9 = vsyncpa [#allocation3 + $0x1], 0 }
   0x2   :  { %10 = vsyncpa [#allocation6], 0 }
   0x3   :  { %12 = vsyncpa [#allocation6 + $0x1], 0 }
   0x4   :  { %13 = vsyncpa [#allocation4], 0 }
   0x5   :  { %15 = vsyncpa [#allocation4 + $0x1], 0  ;;  %s803_s9 = smov 0   ;;  %s805_s10 = smov 0  }
   0x6   :  { %s807_s11 = smov 0   ;;  %s809_s12 = smov 0  }
   0x7   :  { %s811_s13 = smov 0   ;;  %s813_s14 = smov 0  }
   0x8   :  { %s815_s15 = smov 0   ;;  %s817_s16 = smov 0  }
   0x9 LB: > { %s468_s17 = sadd.s32 4294967295, %s778_s16   ;;  %s469_s18 = sadd.s32 4294967294, %s778_s16   ;;  %s778_s16 = sphi %s817_s16, %s21_s16   ;;  %s774_s15 = sphi %s815_s15, %s1071_s15   ;;  %s770_s14 = sphi %s813_s14, %s1070_s14   ;;  %s766_s13 = sphi %s811_s13, %s1040_s13   ;;  %s762_s12 = sphi %s809_s12, %s1069_s12   ;;  %s758_s11 = sphi %s807_s11, %s1068_s11   ;;  %s754_s10 = sphi %s805_s10, %s1067_s10   ;;  %s750_s9 = sphi %s803_s9, %s1066_s9  }
   0xa   : > { %s33_s19 = sadd.s32 1, %s774_s15  ;;  %p747_p1 = scmp.ne.s32.totalorder %s766_s13, 0 }
   0xb   : > { %p35_p0 = scmp.ge.s32.totalorder %s33_s19, 2  ;;  %p54_p2 = scmp.eq.s32.totalorder %s778_s16, 0 }
   0xc   : > { %p59_p3 = scmp.ne.s32.totalorder %s766_s13, %s762_s12  ;;  %p60_p5 = scmp.eq.s32.totalorder %s468_s17, 0 }
   0xd   : > { %s1073_s19 = smov (%p35_p0, %s33_s19), 0  ;;  %p849_p4 = por %p747_p1, %p54_p2 }
   0xe   : > { %p853_p6 = por %p60_p5, %p59_p3  ;;  %s101_s22 = ssub.s32 %s774_s15, %s1073_s19 }
   0xf   : > { %p102_p7 = scmp.eq.s32.totalorder %s101_s22, 0  ;;  %s104_s23 = sadd.s32 1, %s758_s11 }
  0x10   : > { %s1056_s21 = scalar_select %p853_p6, 1, 0 }
  0x11   : > { %s861_s24 = scalar_select %p102_p7, %s758_s11, %s104_s23  }
  0x12   : > { %p114_p8 = scmp.ne.s32.totalorder %s758_s11, %s754_s10  ;;  %p115_p9 = scmp.eq.s32.totalorder %s468_s17, 1 }
  0x13   : > { %p120_p10 = scmp.ne.s32.totalorder %s754_s10, %s750_s9  ;;  %p121_p11 = scmp.eq.s32.totalorder %s469_s18, 1 }
  0x14   : > { %p867_p12 = por %p115_p9, %p114_p8  ;;  %p524_p1 = scmp.lt.s32.totalorder %s778_s16, 2 }
  0x15   : > { %p872_p0 = por %p121_p11, %p120_p10  ;;  %s780_s27 = smov [#allocation2]  }
  0x16   : > { %s1057_s25 = scalar_select %p867_p12, 1, 0 }
  0x17   : > { %s1058_s26 = scalar_select %p872_p0, 1, 0 }
  0x18   : > { %s155_s28 = sshll.u32 %s780_s27, 4  ;;  %p879_p2 = pnand %p524_p1, %p849_p4  ;;  %s156_s28 = int_to_ptr.vmem [resolvable:$true] %s155_s28 }
  0x19   : > { %s611_s4 = scalar_lea.hbm %s1050_s0, 256 }
  0x1a   : > { %p612_p3 = scmp.ne.s32.totalorder %s1050_s0, %s611_s4  ;;  %p613_p5 = pneg %p879_p2 }
  0x1b   : > { %p618_p8 = scmp.lt.u32.totalorder %s611_s4, %s611_s4  ;;  %p620_p9 = scmp.lt.u32.totalorder %s611_s4, %s1050_s0 }
  0x1c   : > { %p614_p7 = pnand %p613_p5, %p612_p3 }
  0x1d   : > { %p621_p10 = por %p620_p9, %p618_p8 }
  0x1e   : > { %p615_p4 = pneg %p614_p7 }
  0x20   : > { %p622_p11 = pnand %p621_p10, %p615_p4 }
  0x22   : > { %625 = shalt.err (!%p622_p11)
}
  0x23   : > { %s626_s12 = scalar_lea.vmem %s156_s28, 256  ;;  %s633_s17 = scalar_lea.vmem %s156_s28, 512 }
  0x24   : > { %p627_p1 = scmp.ne.s32.totalorder %s156_s28, %s626_s12  ;;  %p634_p12 = scmp.lt.s32.totalorder %s156_s28, %s156_s28 }
  0x25   : > { %p635_p6 = scmp.lt.s32.totalorder %s633_s17, %s626_s12 }
  0x26   : > { %p629_p13 = pnand %p627_p1, %p613_p5 }
  0x27   : > { %p636_p3 = por %p635_p6, %p634_p12 }
  0x28   : > { %p630_p0 = pneg %p629_p13 }
  0x2a   : > { %p637_p7 = pnand %p636_p3, %p630_p0 }
  0x2c   : > { %640 = shalt.err (!%p637_p7)
}
  0x2d   : > { %s781_s18 = smov 128   ;;  %s782_s20 = smov 8  }
  0x2e   : > { %516 = dma.hbm_to_vmem [thread:$0]  (!%p879_p2), %s1050_s0, 256, %s156_s28, [#allocation3], %s781_s18, %s781_s18, %s782_s20  }
  0x2f   : > { %p478_p13 = scmp.ge.s32.totalorder %s778_s16, 1  ;;  %p187_p4 = scmp.lt.s32.totalorder %s778_s16, 3 }
  0x30   : > { %s783_s30 = smov [#allocation5]   ;;  %s641_s6 = scalar_lea.hbm %s1051_s1, 256 }
  0x31   : > { %p910_p8 = pnand %p478_p13, %p187_p4  ;;  %s179_s3 = sshll.u32 %s783_s30, 4  ;;  %s180_s3 = int_to_ptr.vmem [resolvable:$true] %s179_s3 }
  0x32   : > { %p642_p6 = scmp.ne.s32.totalorder %s1051_s1, %s641_s6  ;;  %p648_p9 = scmp.lt.u32.totalorder %s641_s6, %s641_s6 }
  0x33   : > { %s1060_s27 = scalar_select %p910_p8, 1, 0 }
  0x34   : > { %p644_p12 = pnand %p642_p6, %p613_p5  ;;  %p650_p10 = scmp.lt.u32.totalorder %s641_s6, %s1051_s1 }
  0x36   : > { %p645_p0 = pneg %p644_p12  ;;  %p651_p11 = por %p650_p10, %p648_p9 }
  0x38   : > { %p652_p1 = pnand %p651_p11, %p645_p0 }
  0x3a   : > { %655 = shalt.err (!%p652_p1)
}
  0x3b   : > { %s656_s17 = scalar_lea.vmem %s180_s3, 256  ;;  %s663_s22 = scalar_lea.vmem %s180_s3, 512 }
  0x3c   : > { %p657_p3 = scmp.ne.s32.totalorder %s180_s3, %s656_s17  ;;  %p664_p4 = scmp.lt.s32.totalorder %s180_s3, %s180_s3 }
  0x3d   : > { %p665_p8 = scmp.lt.s32.totalorder %s663_s22, %s656_s17 }
  0x3e   : > { %p659_p7 = pnand %p657_p3, %p613_p5 }
  0x3f   : > { %p666_p6 = por %p665_p8, %p664_p4 }
  0x40   : > { %p660_p13 = pneg %p659_p7 }
  0x42   : > { %p667_p12 = pnand %p666_p6, %p660_p13 }
  0x44   : > { %670 = shalt.err (!%p667_p12)
}
  0x45   : > { %519 = dma.hbm_to_vmem [thread:$0]  (!%p879_p2), %s1051_s1, 256, %s180_s3, [#allocation6], %s781_s18, %s781_s18, %s782_s20  }
  0x46   : > { %p1061_p0 = scmp.ne.s32.totalorder %s1060_s27, 0 }
  0x47   : > { %s193_s4 = sand.u32 (!%p1061_p0), 1, %s766_s13   ;;  %p1062_p5 = scmp.ne.s32.totalorder (!%p1061_p0), %s1056_s21, 0 }
  0x48   : > { %191 = sbr.rel (%p1061_p0) target bundleno = 166 (0xa6), region = 28  ;;  %s479_s5 = sshll.u32 (!%p1061_p0), %s193_s4, 4 }
  0x49   : > { %s194_s6 = scalar_lea.sflag (!%p1061_p0), [#allocation3], %s193_s4  ;;  %s197_s7 = scalar_lea.vmem (!%p1061_p0), [#allocation2], %s479_s5 }
  0x4f   : > { %736 = dma.done.wait (%p1062_p5), %s194_s6, 256  }
  0x50   : > { %738 = vsyncadd (%p1062_p5), %s194_s6, 4294967040  ;;  %s203_s29 = scalar_lea.sflag [#allocation6], %s193_s4  ;;  %s206_s8 = scalar_lea.vmem [#allocation5], %s479_s5 }
  0x51   : > { %740 = dma.done.wait (%p1062_p5), %s203_s29, 256  }
  0x52   : > { %742 = vsyncadd (%p1062_p5), %s203_s29, 4294967040  ;;  %s229_s18 = sand.u32 1, %s754_s10   ;;  %v784_v0 = vmov 0.0   ;;  %v250_v1 = vld [vmem:[%s197_s7] sm:$0xff]  ;;  %v958_v2 = vld [vmem:[%s197_s7 + $0x8] sm:$0xff]  ;;  %p481_p2 = scmp.ge.s32.totalorder %s770_s14, 1 }
  0x53   : > { %s505_s20 = smul.u32 40, %s229_s18  ;;  %v252_v3 = vld [vmem:[%s206_s8] sm:$0xff]  ;;  %v253_v4 = vld [vmem:[%s206_s8 + $0x8] sm:$0xff]  ;;  %v272_v14 = vadd.f32 (!%p481_p2), %v958_v2, %v250_v1  ;;  %v269_v15 = vand.u32 (!%p481_p2), 2147483647, %v250_v1 }
  0x54   : > { %v254_v5 = vmul.f32 1.442695, %v252_v3  ;;  %v256_v6 = vmul.f32 1.442695, %v253_v4  ;;  %v270_v16 = vand.u32 (!%p481_p2), 2147483647, %v958_v2 }
  0x55   : > { %s951_s27 = scalar_lea.vmem [#allocation7], %s505_s20 }
  0x56   : > { %245 = vst [vmem:[%s951_s27] sm:$0xff] %v784_v0  ;;  %246 = vst [vmem:[%s951_s27 + $0x8] sm:$0xff] %v784_v0  ;;  %603 = vpow2.f32 %v254_v5  ;;  %v277_v23 = vadd.f32 (!%p481_p2), %v270_v16, %v269_v15 }
  0x57   : > { %247 = vst [vmem:[%s951_s27 + $0x10] sm:$0xff] %v784_v0  ;;  %248 = vst [vmem:[%s951_s27 + $0x18] sm:$0xff] %v784_v0  ;;  %605 = vpow2.f32 %v256_v6 }
  0x58   : > { %249 = vst [vmem:[%s951_s27 + $0x20] sm:$0xff] %v784_v0 }
  0x5d   : > { %v271_v13 = vld [vmem:[%s951_s27] sm:$0xff] (!%p481_p2)  ;;  %v482_v18 = vld [vmem:[%s951_s27 + $0x8] sm:$0xff] (!%p481_p2) }
  0x5e   : > { %v273_v22 = vadd.f32 (!%p481_p2), %v272_v14, %v271_v13  ;;  %v484_v24 = vld [vmem:[%s951_s27 + $0x10] sm:$0xff] (!%p481_p2)  ;;  %v486_v28 = vld [vmem:[%s951_s27 + $0x18] sm:$0xff] (!%p481_p2)  ;;  %v278_v30 = vadd.f32 (!%p481_p2), %v482_v18, %v277_v23 }
  0x5f   : > { %v488_v20 = vld [vmem:[%s951_s27 + $0x20] sm:$0xff] (!%p481_p2) }
  0x60   : > { %v604_v7 = vpop.eup %603  ;;  %274 = vst [vmem:[%s951_s27] sm:$0xff] (!%p481_p2), %v273_v22  ;;  %483 = vst [vmem:[%s951_s27 + $0x8] sm:$0xff] (!%p481_p2), %v278_v30 }
  0x61   : > { %v606_v8 = vpop.eup %605  ;;  %v258_v9 = vadd.f32 1.0, %v604_v7 }
  0x62   : > { %v259_v10 = vadd.f32 1.0, %v606_v8 }
  0x63   : > { %607 = vrcp.f32 %v258_v9 }
  0x64   : > { %609 = vrcp.f32 %v259_v10 }
  0x68   : > { %268 = sbr.rel (%p481_p2) target bundleno = 118 (0x76), region = 44 }
  0x6d   : > { %v608_v11 = vpop.eup %607 }
  0x6e   : > { %v610_v12 = vpop.eup %609  ;;  %v282_v17 = vmul.f32 (!%p481_p2), %v608_v11, %v250_v1  ;;  %v289_v25 = vmul.f32 (!%p481_p2), %v608_v11, %v269_v15 }
  0x6f   : > { %v283_v19 = vmul.f32 %v610_v12, %v958_v2  ;;  %v296_v21 = vadd.f32 %v610_v12, %v608_v11  ;;  %v290_v26 = vmul.f32 %v610_v12, %v270_v16 }
  0x71   : > { %v284_v27 = vadd.f32 %v283_v19, %v282_v17  ;;  %v297_v29 = vadd.f32 %v488_v20, %v296_v21  ;;  %v291_v31 = vadd.f32 %v290_v26, %v289_v25 }
  0x73   : > { %v285_v32 = vadd.f32 %v484_v24, %v284_v27  ;;  %489 = vst [vmem:[%s951_s27 + $0x20] sm:$0xff] %v297_v29  ;;  %v292_v33 = vadd.f32 %v486_v28, %v291_v31 }
  0x75   : > { %485 = vst [vmem:[%s951_s27 + $0x10] sm:$0xff] %v285_v32  ;;  %487 = vst [vmem:[%s951_s27 + $0x18] sm:$0xff] %v292_v33 }
  0x76 PF: > { %p490_p8 = scmp.lt.s32.totalorder %s770_s14, 1 }
  0x77   : > { %s491_s21 = sshll.u32 (!%p490_p8), %s770_s14, 11  ;;  %v304_v34 = vlaneseq (!%p490_p8)  ;;  %v322_v48 = vld [vmem:[%s951_s27] sm:$0xff] (!%p490_p8)  ;;  %v492_v55 = vld [vmem:[%s951_s27 + $0x8] sm:$0xff] (!%p490_p8) }
  0x78   : > { %301 = sbr.rel (%p490_p8) target bundleno = 140 (0x8c), region = 48  ;;  %s303_s3 = ssub.s32 (!%p490_p8), 2048, %s491_s21 }
  0x79   : > { %v305_v35 = vshrl.u32 (!%p490_p8), %v304_v34, 7  ;;  %v308_v36 = vand.u32 (!%p490_p8), 127, %v304_v34  ;;  %v313_v39 = vstv (!%p490_p8), %s303_s3 }
  0x7a   : > { %v498_v54 = vld [vmem:[%s951_s27 + $0x20] sm:$0xff] (!%p490_p8) }
  0x7b   : > { %v306_v37 = vadd.s32 (!%p490_p8), 8, %v305_v35  ;;  %v309_v38 = vmul.u32 (!%p490_p8), 128, %v305_v35 }
  0x7c   : > { %v494_v56 = vld [vmem:[%s951_s27 + $0x10] sm:$0xff] (!%p490_p8)  ;;  %v496_v62 = vld [vmem:[%s951_s27 + $0x18] sm:$0xff] (!%p490_p8) }
  0x7d   : > { %v310_v40 = vmul.u32 (!%p490_p8), 128, %v306_v37  ;;  %v311_v41 = vadd.s32 (!%p490_p8), %v309_v38, %v308_v36 }
  0x7f   : > { %v312_v42 = vadd.s32 %v310_v40, %v308_v36  ;;  %vm314_vm0 = vcmp.lt.s32.totalorder %v311_v41, %v313_v39 }
  0x80   : > { %v316_v43 = vsel %vm314_vm0, %v250_v1, 0.0  ;;  %v318_v44 = vsel %vm314_vm0, %v608_v11, 0.0 }
  0x81   : > { %vm315_vm1 = vcmp.lt.s32.totalorder %v312_v42, %v313_v39  ;;  %v320_v45 = vand.u32 2147483647, %v316_v43  ;;  %v333_v46 = vmul.f32 %v318_v44, %v316_v43 }
  0x82   : > { %v317_v47 = vsel %vm315_vm1, %v958_v2, 0.0  ;;  %v319_v49 = vsel %vm315_vm1, %v610_v12, 0.0 }
  0x83   : > { %v323_v50 = vadd.f32 %v317_v47, %v316_v43  ;;  %v321_v51 = vand.u32 2147483647, %v317_v47  ;;  %v334_v52 = vmul.f32 %v319_v49, %v317_v47  ;;  %v340_v53 = vmul.f32 %v320_v45, %v318_v44 }
  0x84   : > { %v347_v57 = vadd.f32 %v319_v49, %v318_v44 }
  0x85   : > { %v324_v58 = vadd.f32 %v323_v50, %v322_v48  ;;  %v328_v59 = vadd.f32 %v321_v51, %v320_v45  ;;  %v335_v60 = vadd.f32 %v334_v52, %v333_v46  ;;  %v341_v61 = vmul.f32 %v321_v51, %v319_v49 }
  0x86   : > { %v348_v63 = vadd.f32 %v498_v54, %v347_v57 }
  0x87   : > { %325 = vst [vmem:[%s951_s27] sm:$0xff] %v324_v58  ;;  %v329_v0 = vadd.f32 %v492_v55, %v328_v59  ;;  %v336_v1 = vadd.f32 %v494_v56, %v335_v60  ;;  %v342_v2 = vadd.f32 %v341_v61, %v340_v53 }
  0x88   : > { %499 = vst [vmem:[%s951_s27 + $0x20] sm:$0xff] %v348_v63 }
  0x89   : > { %493 = vst [vmem:[%s951_s27 + $0x8] sm:$0xff] %v329_v0  ;;  %495 = vst [vmem:[%s951_s27 + $0x10] sm:$0xff] %v336_v1  ;;  %v343_v3 = vadd.f32 %v496_v62, %v342_v2 }
  0x8b   : > { %497 = vst [vmem:[%s951_s27 + $0x18] sm:$0xff] %v343_v3 }
  0x8c PF: > { %s506_s28 = smul.u32 640, %s770_s14  ;;  %s364_s12 = sshll.u32 %s951_s27, 4  ;;  %s994_s12 = int_to_ptr.vmem [resolvable:$true] %s364_s12 }
  0x8d   : > { %s998_s30 = scalar_lea.sflag [#allocation4], %s229_s18  ;;  %s671_s4 = scalar_lea.vmem %s994_s12, 640 }
  0x8e   : > { %s992_s23 = scalar_lea.hbm %s1052_s2, %s506_s28  ;;  %p672_p9 = scmp.ne.s32.totalorder %s994_s12, %s671_s4 }
  0x8f   : > { %p1063_p10 = scmp.ne.s32.totalorder %s1057_s25, 0  ;;  %s785_s14 = smov [#allocation7]  }
  0x90   : > { %s675_s5 = sshll.u32 %s785_s14, 4  ;;  %s676_s5 = int_to_ptr.vmem [resolvable:$false] %s675_s5 }
  0x91   : > { %p673_p11 = pnand %p672_p9, %p1063_p10  ;;  %s677_s6 = scalar_lea.vmem %s676_s5, 1280 }
  0x92   : > { %p678_p3 = scmp.lt.s32.totalorder %s994_s12, %s676_s5  ;;  %p679_p7 = scmp.lt.s32.totalorder %s677_s6, %s671_s4 }
  0x93   : > { %p674_p1 = pneg %p673_p11 }
  0x94   : > { %p680_p13 = por %p679_p7, %p678_p3 }
  0x96   : > { %p681_p4 = pnand %p680_p13, %p674_p1 }
  0x98   : > { %684 = shalt.err (!%p681_p4)
}
  0x99   : > { %s685_s7 = scalar_lea.hbm %s992_s23, 640  ;;  %s689_s18 = scalar_lea.hbm %s1052_s2, 1280 }
  0x9a   : > { %p686_p6 = scmp.ne.s32.totalorder %s992_s23, %s685_s7  ;;  %p690_p5 = scmp.lt.u32.totalorder %s992_s23, %s1052_s2 }
  0x9b   : > { %p691_p2 = scmp.lt.u32.totalorder %s689_s18, %s685_s7  ;;  %p693_p9 = scmp.lt.u32.totalorder %s685_s7, %s992_s23 }
  0x9c   : > { %p687_p12 = pnand %p686_p6, %p1063_p10 }
  0x9d   : > { %p692_p8 = por %p691_p2, %p690_p5 }
  0x9e   : > { %p688_p0 = pneg %p687_p12 }
  0x9f   : > { %p694_p11 = por %p693_p9, %p692_p8 }
  0xa1   : > { %p695_p1 = pnand %p694_p11, %p688_p0 }
  0xa3   : > { %698 = shalt.err (!%p695_p1)
}
  0xa4   : > { %s786_s21 = smov 128   ;;  %s787_s3 = smov 8  }
  0xa5   : > { %511 = dma.vmem_to_hbm [thread:$0]  (%p1063_p10), %s994_s12, 640, %s992_s23, %s998_s30, %s786_s21, %s786_s21, %s787_s3  }
  0xa6 PF: > { %s379_s28 = sand.u32 1, %s750_s9   ;;  %p1064_p3 = scmp.ne.s32.totalorder %s1058_s26, 0 }
  0xa7   : > { %p1065_p7 = scmp.ge.s32.totalorder %s778_s16, 2  ;;  %s380_s17 = scalar_lea.sflag [#allocation4], %s379_s28 }
  0xa9   : > { %p521_p13 = pnand %p1065_p7, %p1064_p3 }
  0xab   : > { %744 = dma.done.wait (!%p521_p13), %s380_s17, 640  }
  0xac   : > { %746 = vsyncadd (!%p521_p13), %s380_s17, 4294966656  ;;  %s21_s16 = sadd.s32 1, %s778_s16   ;;  %s1066_s9 = smov %s754_s10 }
  0xad   : > { %p18_p4 = scmp.ge.s32.totalorder %s21_s16, 4   ;;  %s1067_s10 = smov %s758_s11 }
  0xae   : > { %s1068_s11 = smov %s861_s24  ;;  %s1069_s12 = smov %s766_s13 }
  0xaf   : > { %s1040_s13 = smov 0   ;;  %s1070_s14 = smov %s774_s15 }
  0xb0   : > { %s1071_s15 = smov %s1073_s19  ;;  %20 = sbr.rel (!%p18_p4) target bundleno = 9 (0x9), region = 106 }
  0xb7   :  { %385 = vsyncpa [#allocation3], 1 }
  0xb8   :  { %387 = vsyncpa [#allocation3 + $0x1], 1 }
  0xb9   :  { %388 = vsyncpa [#allocation6], 1 }
  0xba   :  { %390 = vsyncpa [#allocation6 + $0x1], 1 }
  0xbb   :  { %391 = vsyncpa [#allocation4], 1 }
  0xbc   :  { %393 = vsyncpa [#allocation4 + $0x1], 1 }

</bundles_post_ra>
